<compile_context>
chip_gen: v6e
topology: v6e:2x2x1
jax: 0.10.0
libtpu: 0.0.40
codegen_flags: <defaults>
</compile_context>

<pallas_src>
import functools

import jax
import jax.numpy as jnp
from jax.experimental import pallas as pl
from jax.experimental.pallas import tpu as pltpu


def _swish(t):
    # TODO(synk): Swish class is not defined in the source file; assumed x * sigmoid(x).
    return t * jax.nn.sigmoid(t)


def decoder_block_kernel(x_ref, p_ref, s_ref, o_ref, *, N, L, C0):
    eps = 1e-5
    x = x_ref[...]                              # (C0, N*L) channel-major slab
    P = p_ref[...]                              # (C1, C0+7) packed parameters

    W = P[:, 0:C0]                              # fused conv1-3 weight  (C1, C0)
    c = P[:, C0:C0 + 1]                         # fused conv1-3 bias    (C1, 1)
    e = P[:, C0 + 1:C0 + 4]                     # conv3 border columns [e0,e1,e2] (C1, 3)
    g3 = P[:, C0 + 4:C0 + 5]                    # BN3 gamma
    be3 = P[:, C0 + 5:C0 + 6]                   # BN3 beta
    w4 = P[:, C0 + 6:C0 + 7]                    # conv4 weight as a column (C1, 1)
    b4 = s_ref[0]                               # conv4 bias (scalar, SMEM)
    g4 = s_ref[1]                               # BN4 gamma
    be4 = s_ref[2]                              # BN4 beta

    # ---- convs 1-3 interior: one MXU matmul on the unpadded slab ----
    y = jnp.dot(W, x, preferred_element_type=jnp.float32) + c          # (C1, N*L)

    # ---- BatchNorm1d(C1): stats over N*(L+6) positions (interior + 2N copies of each border) ----
    cnt3 = float(N * (L + 6))
    sum3 = jnp.sum(y, axis=1, keepdims=True) + 2.0 * N * jnp.sum(e, axis=1, keepdims=True)
    mean3 = sum3 * (1.0 / cnt3)
    yc = y - mean3
    ec = e - mean3
    var3 = (jnp.sum(yc * yc, axis=1, keepdims=True)
            + 2.0 * N * jnp.sum(ec * ec, axis=1, keepdims=True)) * (1.0 / cnt3)
    a3 = g3 * jax.lax.rsqrt(var3 + eps)
    ys = _swish(a3 * yc + be3)                  # (C1, N*L) interior after BN3+Swish
    es = _swish(a3 * ec + be3)                  # (C1, 3)   border columns after BN3+Swish

    # ---- conv4 (C1 -> 1): VPU broadcast-multiply + sublane reduce (kept off the MXU) ----
    z = jnp.sum(w4 * ys, axis=0, keepdims=True) + b4                   # (1, N*L)
    fz = jnp.sum(w4 * es, axis=0, keepdims=True) + b4                  # (1, 3) = [f1,f2,f3]
    # conv4's own pad column value is f0 = b4.

    # ---- BatchNorm1d(1): stats over N*(L+8) positions + Swish ----
    cnt4 = float(N * (L + 8))
    sum4 = (jnp.sum(z, axis=1, keepdims=True)
            + 2.0 * N * (jnp.sum(fz, axis=1, keepdims=True) + b4))
    mean4 = sum4 * (1.0 / cnt4)
    zc = z - mean4
    fzc = fz - mean4
    f0c = b4 - mean4                            # (1, 1)
    var4 = (jnp.sum(zc * zc, axis=1, keepdims=True)
            + 2.0 * N * (jnp.sum(fzc * fzc, axis=1, keepdims=True) + f0c * f0c)) * (1.0 / cnt4)
    a4 = g4 * jax.lax.rsqrt(var4 + eps)
    zs = _swish(a4 * zc + be4)                  # (1, N*L) interior
    gs = _swish(a4 * fzc + be4)                 # (1, 3)   [g1, g2, g3]
    g0 = _swish(a4 * f0c + be4)                 # (1, 1)

    # ---- assemble (1, N*(L+8)): per sample [g0,g1,g2,g3, interior_L, g3,g2,g1,g0] ----
    left = jnp.concatenate([g0, gs], axis=1)                                   # (1, 4)
    right = jnp.concatenate([gs[:, 2:3], gs[:, 1:2], gs[:, 0:1], g0], axis=1)  # (1, 4)
    pieces = []
    for n in range(N):                          # static trace-time loop, small N
        pieces += [left, zs[:, n * L:(n + 1) * L], right]
    o_ref[...] = jnp.concatenate(pieces, axis=1)


def _fuse_params(p):
    """Trace-time pre-composition of convs 1-3 and packing of all small parameters."""
    W1, b1 = p["w1"], p["b1"]
    W2, b2 = p["w2"], p["b2"]
    W3, b3 = p["w3"], p["b3"]
    W321 = W3 @ (W2 @ W1)                       # (C1, C0) fused conv1-3 weight
    e0 = b3                                     # conv3 output at its own pad column
    e1 = W3 @ b2 + b3                           # one column in from the pad
    e2 = W3 @ (W2 @ b1 + b2) + b3               # two columns in (== fused interior bias)
    packed = jnp.concatenate(
        [W321, e2, e0, e1, e2, p["g3"], p["be3"], p["w4"].T], axis=1)          # (C1, C0+7)
    scalars = jnp.concatenate(
        [p["b4"].reshape(1), p["g4"].reshape(1), p["be4"].reshape(1)])         # (3,)
    return packed, scalars


def decoder_block_forward(x, params):
    """x: (N, C0, L) float32 (NCL, like PyTorch Conv1d). Returns (N, 1, L+8)."""
    N, C0, L = x.shape
    Lout = L + 8
    x2d = jnp.transpose(x, (1, 0, 2)).reshape(C0, N * L)    # channel-major slab
    packed, scalars = _fuse_params(params)

    out2d = pl.pallas_call(
        functools.partial(decoder_block_kernel, N=N, L=L, C0=C0),
        out_shape=jax.ShapeDtypeStruct((1, N * Lout), jnp.float32),
        in_specs=[
            pl.BlockSpec(memory_space=pltpu.MemorySpace.VMEM),   # x slab
            pl.BlockSpec(memory_space=pltpu.MemorySpace.VMEM),   # packed params
            pl.BlockSpec(memory_space=pltpu.MemorySpace.SMEM),   # 3 true scalars
        ],
        out_specs=pl.BlockSpec(memory_space=pltpu.MemorySpace.VMEM),
    )(x2d, packed, scalars)

    return jnp.transpose(out2d.reshape(1, N, Lout), (1, 0, 2))   # (N, 1, L+8)


def init_params(key, channels):
    """Deterministic parameter init (PyTorch-like uniform for convs, 1/0 for BN)."""
    c0, c1 = channels
    ks = jax.random.split(key, 8)

    def conv_init(kw, kb, cout, cin):
        bound = 1.0 / jnp.sqrt(cin)
        w = jax.random.uniform(kw, (cout, cin), jnp.float32, -bound, bound)
        b = jax.random.uniform(kb, (cout, 1), jnp.float32, -bound, bound)
        return w, b

    w1, b1 = conv_init(ks[0], ks[1], c1, c0)
    w2, b2 = conv_init(ks[2], ks[3], c1, c1)
    w3, b3 = conv_init(ks[4], ks[5], c1, c1)
    w4, b4 = conv_init(ks[6], ks[7], 1, c1)
    return dict(
        w1=w1, b1=b1, w2=w2, b2=b2, w3=w3, b3=b3,
        g3=jnp.ones((c1, 1), jnp.float32), be3=jnp.zeros((c1, 1), jnp.float32),
        w4=w4, b4=b4,
        g4=jnp.ones((1, 1), jnp.float32), be4=jnp.zeros((1, 1), jnp.float32),
    )


def reference_forward(x, p):
    """Pure-JAX reference matching PyTorch training-mode forward."""
    def conv(x, w, b):
        xp = jnp.pad(x, ((0, 0), (0, 0), (1, 1)))
        return jnp.einsum("oc,ncl->nol", w, xp) + b.reshape(1, -1, 1)

    def bn(x, g, be, eps=1e-5):
        m = x.mean(axis=(0, 2), keepdims=True)
        v = ((x - m) ** 2).mean(axis=(0, 2), keepdims=True)
        return g.reshape(1, -1, 1) * (x - m) / jnp.sqrt(v + eps) + be.reshape(1, -1, 1)

    def swish(x):
        return x * jax.nn.sigmoid(x)

    y = conv(x, p["w1"], p["b1"])
    y = conv(y, p["w2"], p["b2"])
    y = conv(y, p["w3"], p["b3"])
    y = swish(bn(y, p["g3"], p["be3"]))
    y = conv(y, p["w4"], p["b4"])
    y = swish(bn(y, p["g4"], p["be4"]))
    return y


if __name__ == "__main__":
    channels = [4, 8]
    N, L = 2, 16

    key = jax.random.PRNGKey(0)
    kx, kp = jax.random.split(key)
    x = jax.random.normal(kx, (N, channels[0], L), jnp.float32)
    params = init_params(kp, channels)

    out = decoder_block_forward(x, params)
    out = jax.block_until_ready(out)

    ref = reference_forward(x, params)
    assert out.shape == (N, 1, L + 8), out.shape
    assert jnp.allclose(out, ref, atol=1e-4, rtol=1e-4), float(jnp.max(jnp.abs(out - ref)))
    print("KERNEL_OK")
</pallas_src>

<mosaic_0001>
module attributes {stable_mosaic.version = 11 : i64} {
  func.func @decoder_block_kernel(%arg0: memref<4x32xf32, #tpu.memory_space<vmem>>, %arg1: memref<8x11xf32, #tpu.memory_space<vmem>>, %arg2: memref<3xf32, #tpu.memory_space<smem>>, %arg3: memref<1x48xf32, #tpu.memory_space<vmem>>) attributes {dimension_semantics = [], scalar_prefetch = 0 : i64, scratch_operands = 0 : i64, tpu.core_type = #tpu.core_type<tc>} {
    %c0 = arith.constant 0 : index
    %c0_0 = arith.constant 0 : index
    %0 = vector.load %arg0[%c0, %c0_0] : memref<4x32xf32, #tpu.memory_space<vmem>>, vector<4x32xf32>
    %c0_1 = arith.constant 0 : index
    %c0_2 = arith.constant 0 : index
    %1 = vector.load %arg1[%c0_1, %c0_2] : memref<8x11xf32, #tpu.memory_space<vmem>>, vector<8x11xf32>
    %2 = vector.extract_strided_slice %1 {offsets = [0, 0], sizes = [8, 4], strides = [1, 1]} : vector<8x11xf32> to vector<8x4xf32>
    %3 = vector.extract_strided_slice %1 {offsets = [0, 4], sizes = [8, 1], strides = [1, 1]} : vector<8x11xf32> to vector<8x1xf32>
    %4 = vector.extract_strided_slice %1 {offsets = [0, 5], sizes = [8, 3], strides = [1, 1]} : vector<8x11xf32> to vector<8x3xf32>
    %5 = vector.extract_strided_slice %1 {offsets = [0, 8], sizes = [8, 1], strides = [1, 1]} : vector<8x11xf32> to vector<8x1xf32>
    %6 = vector.extract_strided_slice %1 {offsets = [0, 9], sizes = [8, 1], strides = [1, 1]} : vector<8x11xf32> to vector<8x1xf32>
    %7 = vector.extract_strided_slice %1 {offsets = [0, 10], sizes = [8, 1], strides = [1, 1]} : vector<8x11xf32> to vector<8x1xf32>
    %c0_3 = arith.constant 0 : index
    %8 = memref.load %arg2[%c0_3] : memref<3xf32, #tpu.memory_space<smem>>
    %c1 = arith.constant 1 : index
    %9 = memref.load %arg2[%c1] : memref<3xf32, #tpu.memory_space<smem>>
    %c2 = arith.constant 2 : index
    %10 = memref.load %arg2[%c2] : memref<3xf32, #tpu.memory_space<smem>>
    %cst = arith.constant dense<0.000000e+00> : vector<8x32xf32>
    %11 = tpu.matmul %2, %0, %cst {dimension_numbers = #tpu.dot_dimension_numbers<[1], [0], [0], [1], [0, 0, 1, 1], [], []>} : vector<8x4xf32>, vector<4x32xf32>, vector<8x32xf32> -> vector<8x32xf32>
    %12 = vector.broadcast %3 : vector<8x1xf32> to vector<8x32xf32>
    %13 = arith.addf %11, %12 : vector<8x32xf32>
    %cst_4 = arith.constant dense<0.000000e+00> : vector<8xf32>
    %14 = vector.multi_reduction <add>, %13, %cst_4 [1] : vector<8x32xf32> to vector<8xf32>
    %15 = vector.shape_cast %14 : vector<8xf32> to vector<8x1xf32>
    %cst_5 = arith.constant dense<0.000000e+00> : vector<8xf32>
    %16 = vector.multi_reduction <add>, %4, %cst_5 [1] : vector<8x3xf32> to vector<8xf32>
    %17 = vector.shape_cast %16 : vector<8xf32> to vector<8x1xf32>
    %cst_6 = arith.constant 4.000000e+00 : f32
    %18 = vector.broadcast %cst_6 : f32 to vector<8x1xf32>
    %19 = arith.mulf %18, %17 : vector<8x1xf32>
    %20 = arith.addf %15, %19 : vector<8x1xf32>
    %cst_7 = arith.constant 0.0227272734 : f32
    %21 = vector.broadcast %cst_7 : f32 to vector<8x1xf32>
    %22 = arith.mulf %20, %21 : vector<8x1xf32>
    %23 = vector.broadcast %22 : vector<8x1xf32> to vector<8x32xf32>
    %24 = arith.subf %13, %23 : vector<8x32xf32>
    %25 = vector.broadcast %22 : vector<8x1xf32> to vector<8x3xf32>
    %26 = arith.subf %4, %25 : vector<8x3xf32>
    %27 = arith.mulf %24, %24 : vector<8x32xf32>
    %cst_8 = arith.constant dense<0.000000e+00> : vector<8xf32>
    %28 = vector.multi_reduction <add>, %27, %cst_8 [1] : vector<8x32xf32> to vector<8xf32>
    %29 = vector.shape_cast %28 : vector<8xf32> to vector<8x1xf32>
    %30 = arith.mulf %26, %26 : vector<8x3xf32>
    %cst_9 = arith.constant dense<0.000000e+00> : vector<8xf32>
    %31 = vector.multi_reduction <add>, %30, %cst_9 [1] : vector<8x3xf32> to vector<8xf32>
    %32 = vector.shape_cast %31 : vector<8xf32> to vector<8x1xf32>
    %cst_10 = arith.constant 4.000000e+00 : f32
    %33 = vector.broadcast %cst_10 : f32 to vector<8x1xf32>
    %34 = arith.mulf %33, %32 : vector<8x1xf32>
    %35 = arith.addf %29, %34 : vector<8x1xf32>
    %cst_11 = arith.constant 0.0227272734 : f32
    %36 = vector.broadcast %cst_11 : f32 to vector<8x1xf32>
    %37 = arith.mulf %35, %36 : vector<8x1xf32>
    %cst_12 = arith.constant 9.99999974E-6 : f32
    %38 = vector.broadcast %cst_12 : f32 to vector<8x1xf32>
    %39 = arith.addf %37, %38 : vector<8x1xf32>
    %40 = math.rsqrt %39 : vector<8x1xf32>
    %41 = arith.mulf %5, %40 : vector<8x1xf32>
    %42 = vector.broadcast %41 : vector<8x1xf32> to vector<8x32xf32>
    %43 = arith.mulf %42, %24 : vector<8x32xf32>
    %44 = vector.broadcast %6 : vector<8x1xf32> to vector<8x32xf32>
    %45 = arith.addf %43, %44 : vector<8x32xf32>
    %46 = arith.negf %45 : vector<8x32xf32>
    %47 = math.exp %46 : vector<8x32xf32>
    %cst_13 = arith.constant 1.000000e+00 : f32
    %48 = vector.broadcast %cst_13 : f32 to vector<8x32xf32>
    %49 = arith.addf %48, %47 : vector<8x32xf32>
    %50 = arith.divf %48, %49 : vector<8x32xf32>
    %51 = arith.mulf %45, %50 : vector<8x32xf32>
    %52 = vector.broadcast %41 : vector<8x1xf32> to vector<8x3xf32>
    %53 = arith.mulf %52, %26 : vector<8x3xf32>
    %54 = vector.broadcast %6 : vector<8x1xf32> to vector<8x3xf32>
    %55 = arith.addf %53, %54 : vector<8x3xf32>
    %56 = arith.negf %55 : vector<8x3xf32>
    %57 = math.exp %56 : vector<8x3xf32>
    %cst_14 = arith.constant 1.000000e+00 : f32
    %58 = vector.broadcast %cst_14 : f32 to vector<8x3xf32>
    %59 = arith.addf %58, %57 : vector<8x3xf32>
    %60 = arith.divf %58, %59 : vector<8x3xf32>
    %61 = arith.mulf %55, %60 : vector<8x3xf32>
    %62 = vector.broadcast %7 : vector<8x1xf32> to vector<8x32xf32>
    %63 = arith.mulf %62, %51 : vector<8x32xf32>
    %cst_15 = arith.constant dense<0.000000e+00> : vector<32xf32>
    %64 = vector.multi_reduction <add>, %63, %cst_15 [0] : vector<8x32xf32> to vector<32xf32>
    %65 = vector.shape_cast %64 : vector<32xf32> to vector<1x32xf32>
    %66 = vector.broadcast %8 : f32 to vector<1x32xf32>
    %67 = arith.addf %65, %66 : vector<1x32xf32>
    %68 = vector.broadcast %7 : vector<8x1xf32> to vector<8x3xf32>
    %69 = arith.mulf %68, %61 : vector<8x3xf32>
    %cst_16 = arith.constant dense<0.000000e+00> : vector<3xf32>
    %70 = vector.multi_reduction <add>, %69, %cst_16 [0] : vector<8x3xf32> to vector<3xf32>
    %71 = vector.shape_cast %70 : vector<3xf32> to vector<1x3xf32>
    %72 = vector.broadcast %8 : f32 to vector<1x3xf32>
    %73 = arith.addf %71, %72 : vector<1x3xf32>
    %cst_17 = arith.constant dense<0.000000e+00> : vector<1xf32>
    %74 = vector.multi_reduction <add>, %67, %cst_17 [1] : vector<1x32xf32> to vector<1xf32>
    %75 = vector.shape_cast %74 : vector<1xf32> to vector<1x1xf32>
    %cst_18 = arith.constant dense<0.000000e+00> : vector<1xf32>
    %76 = vector.multi_reduction <add>, %73, %cst_18 [1] : vector<1x3xf32> to vector<1xf32>
    %77 = vector.shape_cast %76 : vector<1xf32> to vector<1x1xf32>
    %78 = vector.broadcast %8 : f32 to vector<1x1xf32>
    %79 = arith.addf %77, %78 : vector<1x1xf32>
    %cst_19 = arith.constant 4.000000e+00 : f32
    %80 = vector.broadcast %cst_19 : f32 to vector<1x1xf32>
    %81 = arith.mulf %80, %79 : vector<1x1xf32>
    %82 = arith.addf %75, %81 : vector<1x1xf32>
    %cst_20 = arith.constant 0.020833334 : f32
    %83 = vector.broadcast %cst_20 : f32 to vector<1x1xf32>
    %84 = arith.mulf %82, %83 : vector<1x1xf32>
    %85 = vector.broadcast %84 : vector<1x1xf32> to vector<1x32xf32>
    %86 = arith.subf %67, %85 : vector<1x32xf32>
    %87 = vector.broadcast %84 : vector<1x1xf32> to vector<1x3xf32>
    %88 = arith.subf %73, %87 : vector<1x3xf32>
    %89 = vector.broadcast %8 : f32 to vector<1x1xf32>
    %90 = arith.subf %89, %84 : vector<1x1xf32>
    %91 = arith.mulf %86, %86 : vector<1x32xf32>
    %cst_21 = arith.constant dense<0.000000e+00> : vector<1xf32>
    %92 = vector.multi_reduction <add>, %91, %cst_21 [1] : vector<1x32xf32> to vector<1xf32>
    %93 = vector.shape_cast %92 : vector<1xf32> to vector<1x1xf32>
    %94 = arith.mulf %88, %88 : vector<1x3xf32>
    %cst_22 = arith.constant dense<0.000000e+00> : vector<1xf32>
    %95 = vector.multi_reduction <add>, %94, %cst_22 [1] : vector<1x3xf32> to vector<1xf32>
    %96 = vector.shape_cast %95 : vector<1xf32> to vector<1x1xf32>
    %97 = arith.mulf %90, %90 : vector<1x1xf32>
    %98 = arith.addf %96, %97 : vector<1x1xf32>
    %cst_23 = arith.constant 4.000000e+00 : f32
    %99 = vector.broadcast %cst_23 : f32 to vector<1x1xf32>
    %100 = arith.mulf %99, %98 : vector<1x1xf32>
    %101 = arith.addf %93, %100 : vector<1x1xf32>
    %cst_24 = arith.constant 0.020833334 : f32
    %102 = vector.broadcast %cst_24 : f32 to vector<1x1xf32>
    %103 = arith.mulf %101, %102 : vector<1x1xf32>
    %cst_25 = arith.constant 9.99999974E-6 : f32
    %104 = vector.broadcast %cst_25 : f32 to vector<1x1xf32>
    %105 = arith.addf %103, %104 : vector<1x1xf32>
    %106 = math.rsqrt %105 : vector<1x1xf32>
    %107 = vector.broadcast %9 : f32 to vector<1x1xf32>
    %108 = arith.mulf %107, %106 : vector<1x1xf32>
    %109 = vector.broadcast %108 : vector<1x1xf32> to vector<1x32xf32>
    %110 = arith.mulf %109, %86 : vector<1x32xf32>
    %111 = vector.broadcast %10 : f32 to vector<1x32xf32>
    %112 = arith.addf %110, %111 : vector<1x32xf32>
    %113 = arith.negf %112 : vector<1x32xf32>
    %114 = math.exp %113 : vector<1x32xf32>
    %cst_26 = arith.constant 1.000000e+00 : f32
    %115 = vector.broadcast %cst_26 : f32 to vector<1x32xf32>
    %116 = arith.addf %115, %114 : vector<1x32xf32>
    %117 = arith.divf %115, %116 : vector<1x32xf32>
    %118 = arith.mulf %112, %117 : vector<1x32xf32>
    %119 = vector.broadcast %108 : vector<1x1xf32> to vector<1x3xf32>
    %120 = arith.mulf %119, %88 : vector<1x3xf32>
    %121 = vector.broadcast %10 : f32 to vector<1x3xf32>
    %122 = arith.addf %120, %121 : vector<1x3xf32>
    %123 = arith.negf %122 : vector<1x3xf32>
    %124 = math.exp %123 : vector<1x3xf32>
    %cst_27 = arith.constant 1.000000e+00 : f32
    %125 = vector.broadcast %cst_27 : f32 to vector<1x3xf32>
    %126 = arith.addf %125, %124 : vector<1x3xf32>
    %127 = arith.divf %125, %126 : vector<1x3xf32>
    %128 = arith.mulf %122, %127 : vector<1x3xf32>
    %129 = arith.mulf %108, %90 : vector<1x1xf32>
    %130 = vector.broadcast %10 : f32 to vector<1x1xf32>
    %131 = arith.addf %129, %130 : vector<1x1xf32>
    %132 = arith.negf %131 : vector<1x1xf32>
    %133 = math.exp %132 : vector<1x1xf32>
    %cst_28 = arith.constant 1.000000e+00 : f32
    %134 = vector.broadcast %cst_28 : f32 to vector<1x1xf32>
    %135 = arith.addf %134, %133 : vector<1x1xf32>
    %136 = arith.divf %134, %135 : vector<1x1xf32>
    %137 = arith.mulf %131, %136 : vector<1x1xf32>
    %138 = tpu.concatenate %137, %128 in 1 : vector<1x1xf32>, vector<1x3xf32> -> vector<1x4xf32>
    %139 = vector.extract_strided_slice %128 {offsets = [0, 2], sizes = [1, 1], strides = [1, 1]} : vector<1x3xf32> to vector<1x1xf32>
    %140 = vector.extract_strided_slice %128 {offsets = [0, 1], sizes = [1, 1], strides = [1, 1]} : vector<1x3xf32> to vector<1x1xf32>
    %141 = vector.extract_strided_slice %128 {offsets = [0, 0], sizes = [1, 1], strides = [1, 1]} : vector<1x3xf32> to vector<1x1xf32>
    %142 = tpu.concatenate %139, %140, %141, %137 in 1 : vector<1x1xf32>, vector<1x1xf32>, vector<1x1xf32>, vector<1x1xf32> -> vector<1x4xf32>
    %143 = vector.extract_strided_slice %118 {offsets = [0, 0], sizes = [1, 16], strides = [1, 1]} : vector<1x32xf32> to vector<1x16xf32>
    %144 = vector.extract_strided_slice %118 {offsets = [0, 16], sizes = [1, 16], strides = [1, 1]} : vector<1x32xf32> to vector<1x16xf32>
    %145 = tpu.concatenate %138, %143, %142, %138, %144, %142 in 1 : vector<1x4xf32>, vector<1x16xf32>, vector<1x4xf32>, vector<1x4xf32>, vector<1x16xf32>, vector<1x4xf32> -> vector<1x48xf32>
    %c0_29 = arith.constant 0 : index
    %c0_30 = arith.constant 0 : index
    %146 = vector.load %arg3[%c0_29, %c0_30] : memref<1x48xf32, #tpu.memory_space<vmem>>, vector<1x48xf32>
    tpu.vector_store %arg3[%c0_29, %c0_30], %145 {strides = array<i32>} : memref<1x48xf32, #tpu.memory_space<vmem>>, vector<1x48xf32>,
    return
  }
}

</mosaic_0001>

<bundles_post_ra>
// kernel: tpu_custom_call.1
= control target key start
LH: loop header
LB: loop body
LE: loop exit
PB: predicated region body
PF: predicated region fallthrough
CT: control target
= control target key end

     0   :  { %8 = vsyncpa [#allocation3], 0  ;;  %s567_s0 = inlined_call_operand.hbm [shape: f32[4,32], index: 0, kind: input, shape index: {}]   ;;  %s568_s1 = inlined_call_operand.hbm [shape: f32[8,11], index: 1, kind: input, shape index: {}]   ;;  %s569_s2 = inlined_call_operand.vmem [shape: f32[3], index: 2, kind: input, shape index: {}]   ;;  %s570_s3 = inlined_call_operand.hbm [shape: f32[1,48], index: 3, kind: output, shape index: {}]  }
   0x1   :  { %9 = vsyncpa [#allocation7], 0 }
   0x2   :  { %10 = vsyncpa [#allocation5], 0 }
   0x3   :  { %11 = vsyncpa [#allocation4], 0  ;;  %s499_s12 = smov [#allocation2]   ;;  %s500_s14 = smov [#allocation6]  }
   0x4   :  { %s18_s13 = sshll.u32 %s499_s12, 4  ;;  %s28_s15 = sshll.u32 %s500_s14, 4  ;;  %s19_s13 = int_to_ptr.vmem [resolvable:$true] %s18_s13  ;;  %s29_s15 = int_to_ptr.vmem [resolvable:$true] %s28_s15 }
   0x5   :  { %s427_s16 = scalar_lea.vmem %s19_s13, 64  ;;  %p432_p1 = scmp.lt.s32.totalorder %s19_s13, %s19_s13 }
   0x6   :  { %p428_p0 = scmp.ne.s32.totalorder %s19_s13, %s427_s16  ;;  %p433_p2 = scmp.lt.s32.totalorder %s427_s16, %s427_s16 }
   0x8   :  { %p434_p3 = por %p433_p2, %p432_p1 }
   0xa   :  { %p435_p4 = pnand %p434_p3, %p428_p0 }
   0xc   :  { %438 = shalt.err (!%p435_p4)
}
   0xd   :  { %21 = dma.hbm_to_vmem [thread:$0]  %s567_s0, 64, %s19_s13, [#allocation3]  }
   0xe   :  { %s447_s19 = scalar_lea.vmem %s29_s15, 128  ;;  %p452_p6 = scmp.lt.s32.totalorder %s29_s15, %s29_s15 }
   0xf   :  { %p448_p5 = scmp.ne.s32.totalorder %s29_s15, %s447_s19  ;;  %p453_p7 = scmp.lt.s32.totalorder %s447_s19, %s447_s19 }
  0x11   :  { %p454_p8 = por %p453_p7, %p452_p6 }
  0x13   :  { %p455_p9 = pnand %p454_p8, %p448_p5 }
  0x15   :  { %458 = shalt.err (!%p455_p9)
}
  0x16   :  { %31 = dma.hbm_to_vmem [thread:$0]  %s568_s1, 128, %s29_s15, [#allocation7]  }
  0x17   :  { %s38_s24 = sshll.u32 %s569_s2, 4  ;;  %s39_s24 = int_to_ptr.vmem [resolvable:$true] %s38_s24 }
  0x18   :  { %s459_s25 = scalar_lea.vmem %s39_s24, 16  ;;  %p464_p11 = scmp.lt.s32.totalorder %s39_s24, %s39_s24 }
  0x19   :  { %p460_p10 = scmp.ne.s32.totalorder %s39_s24, %s459_s25  ;;  %p465_p12 = scmp.lt.s32.totalorder %s459_s25, %s459_s25 }
  0x1b   :  { %p466_p13 = por %p465_p12, %p464_p11 }
  0x1d   :  { %p467_p0 = pnand %p466_p13, %p460_p10 }
  0x1f   :  { %470 = shalt.err (!%p467_p0)
}
  0x20   :  { %s501_s0 = smov [#allocation8]  }
  0x21   :  { %41 = dma.vmem_to_smem %s39_s24, 16, %s501_s0, [#allocation5]  }
  0x22   :  { %491 = dma.done.wait [#allocation3], 64  }
  0x23   :  { %492 = vsyncadd [#allocation3], 4294967232 }
  0x24   :  { %493 = dma.done.wait [#allocation7], 128  }
  0x25   :  { %494 = vsyncadd [#allocation7], 4294967168 }
  0x26   :  { %495 = dma.done.wait [#allocation5], 16  }
  0x27   :  { %496 = vsyncadd [#allocation5], 4294967280 }
  0x28   :  { %51 = sfence }
  0x29   :  { %v52_v0 = vld [vmem:[#allocation2] sm:$0xf]  ;;  %vm65_vm0 = vcmask 1043456   ;;  %v53_v1 = vld [vmem:[#allocation6] sm:$0xff]  ;;  %v502_v2 = vmov 0.0   ;;  %vm503_vm1 = vmmov 0  }
  0x2a   :  { %366 = vmatprep.subr.mxu0 %v502_v2  ;;  %368 = vmatprep.mubr.msk.f32.mxu0 %vm503_vm1, %v502_v2  ;;  %vm62_vm2 = vcmask 31744   ;;  %v504_v3 = vmov 4   ;;  %s505_s1 = smov 123   ;;  %vm146_vm3 = vcmask 23552   ;;  %vm139_vm4 = vcmask 261120   ;;  %s54_s2 = sld [smem:[#allocation8]] }
  0x2b   :  { %367 = vmatpush3.msk.msra.mxu0 %vm65_vm0, %v52_v0  ;;  %390 = vset.pattern.permute.xlu0 %v504_v3  ;;  %v506_v23 = vmov 8   ;;  %v507_v24 = vmov 10   ;;  %v508_v33 = vmov 9   ;;  %vm215_vm5 = vcmask 64552   ;;  %s355_s26 = sld [smem:[#allocation8 + $0x1]]  ;;  %s509_s28 = smov 125  }
  0x2c   :  { %369 = vmatmul.mubr.msk.f32.vlgmr.msra.gmra.mxu0 %vm62_vm2, %v53_v1  ;;  %59 = vperm.xlu0 %390, %v53_v1   ;;  %s356_s27 = sld [smem:[#allocation8 + $0x2]]  ;;  %s510_s29 = smov 121   ;;  %vm294_vm6 = vcmask 7168   ;;  %vm306_vm7 = vcmask 15360   ;;  %vm328_vm8 = vcmask 162816   ;;  %vm330_vm9 = vcmask 195584  }
  0x2d   :  { %391 = vset.pattern.permute.xlu1 %v506_v23  ;;  %s511_s30 = smov 124   ;;  %s512_s4 = smov 4   ;;  %vm332_vm10 = vcmask 228352   ;;  %vm334_vm11 = vcmask 359424   ;;  %vm336_vm12 = vcmask 385024  }
  0x2e   :  { %s513_s5 = smov 44   ;;  %s514_s6 = smov 24  }
  0x2f   :  { %s515_s7 = smov 20   ;;  %s516_s8 = smov 12  }
  0x30   :  { %143 = vrot.lane.b32.xlu0 %v53_v1, %s505_s1  ;;  %v212_v0 = vstv %s54_s2  ;;  %s517_s9 = smov [#allocation9]  }
  0x31   :  { %394 = vset.pattern.permute.xlu0 %v507_v24  ;;  %s344_s10 = sshll.u32 %s517_s9, 4  ;;  %s345_s10 = int_to_ptr.vmem [resolvable:$true] %s344_s10 }
  0x32   :  { %s471_s11 = scalar_lea.vmem %s345_s10, 16  ;;  %s475_s12 = scalar_lea.vmem %s345_s10, 32 }
  0x33   :  { %p472_p1 = scmp.ne.s32.totalorder %s345_s10, %s471_s11  ;;  %p476_p2 = scmp.lt.s32.totalorder %s345_s10, %s345_s10 }
  0x34   :  { %p477_p3 = scmp.lt.s32.totalorder %s475_s12, %s471_s11 }
  0x36   :  { %p478_p4 = por %p477_p3, %p476_p2 }
  0x38   :  { %p479_p5 = pnand %p478_p4, %p472_p1 }
  0xa7   :  { %v60_v4 = vpop.permute.xlu0 %59 }
  0xab   :  { %v144_v5 = vpop.permute.xlu0 %143 }
  0xac   :  { %v147_v6 = vsel %vm146_vm3, %v144_v5, 0.0 }
  0xad   :  { %148 = vadd.xlane.f32.xlu1 %v147_v6 }
  0xec   :  { %v135_v7 = vpop.f32.mrf.mxu0 }
  0xed   :  { %v136_v8 = vadd.f32 %v135_v7, %v60_v4 }
  0xee   :  { %v370_v9 = vpop.f32.mrf.mxu0 }
  0xef   :  { %v140_v10 = vsel %vm139_vm4, %v136_v8, 0.0 }
  0xf0   :  { %141 = vadd.xlane.f32.xlu1 %v140_v10 }
 0x136   :  { %v149_v11 = vpop.xlane.xlu1 %148 }
 0x137   :  { %v150_v12 = vmul.f32 4.0, %v149_v11 }
 0x179   :  { %v142_v13 = vpop.xlane.xlu1 %141 }
 0x17a   :  { %v151_v14 = vadd.f32 %v150_v12, %v142_v13 }
 0x17c   :  { %v152_v15 = vmul.f32 0.022727273, %v151_v14 }
 0x17e   :  { %v154_v16 = vsub.f32 %v53_v1, %v152_v15  ;;  %v153_v18 = vsub.f32 %v136_v8, %v152_v15 }
 0x180   :  { %v159_v17 = vmul.f32 %v154_v16, %v154_v16  ;;  %v155_v19 = vmul.f32 %v153_v18, %v153_v18 }
 0x182   :  { %161 = vrot.lane.b32.xlu0 %v159_v17, %s505_s1  ;;  %v156_v20 = vsel %vm139_vm4, %v155_v19, 0.0 }
 0x1a1   :  { %157 = vadd.xlane.f32.xlu0 %v156_v20 }
 0x1f4   :  { %v162_v21 = vpop.permute.xlu0 %161 }
 0x1f5   :  { %v164_v22 = vsel %vm146_vm3, %v162_v21, 0.0 }
 0x1f6   :  { %165 = vadd.xlane.f32.xlu1 %v164_v22 }
 0x22a   :  { %v158_v27 = vpop.xlane.xlu0 %157 }
 0x27f   :  { %v166_v25 = vpop.xlane.xlu1 %165 }
 0x280   :  { %v167_v26 = vmul.f32 4.0, %v166_v25 }
 0x282   :  { %v168_v28 = vadd.f32 %v167_v26, %v158_v27 }
 0x284   :  { %v169_v29 = vmul.f32 0.022727273, %v168_v28 }
 0x286   :  { %v170_v30 = vadd.f32 1e-05, %v169_v29 }
 0x288   :  { %395 = vrsqrt.f32 %v170_v30 }
 0x295   :  { %v396_v31 = vpop.eup %395 }
 0x296   :  { %v172_v32 = vmul.f32 %v396_v31, %v53_v1  ;;  %v260_v31 = vstv %s355_s26 }
 0x298   :  { %175 = vperm.xlu1 %391, %v172_v32  }
 0x29c   :  { %392 = vset.pattern.permute.xlu1 %v508_v33 }
 0x29d   :  { %180 = vperm.xlu1 %392, %v53_v1  }
 0x2a1   :  { %393 = vset.pattern.permute.xlu1 %v507_v24 }
 0x2a2   :  { %201 = vperm.xlu1 %393, %v53_v1  }
 0x313   :  { %v176_v34 = vpop.permute.xlu1 %175 }
 0x314   :  { %v178_v35 = vmul.f32 %v176_v34, %v153_v18  ;;  %v191_v36 = vmul.f32 %v176_v34, %v154_v16  ;;  %v263_v34 = vstv %s356_s27 }
 0x318   :  { %v181_v37 = vpop.permute.xlu1 %180 }
 0x319   :  { %v183_v38 = vadd.f32 %v181_v37, %v178_v35  ;;  %v192_v39 = vadd.f32 %v191_v36, %v181_v37 }
 0x31b   :  { %v359_v40 = vmul.f32 -1.442695, %v183_v38  ;;  %v360_v41 = vmul.f32 -1.442695, %v192_v39 }
 0x31d   :  { %397 = vpow2.f32 %v359_v40  ;;  %v202_v47 = vpop.permute.xlu1 %201 }
 0x31e   :  { %399 = vpow2.f32 %v360_v41 }
 0x32a   :  { %v398_v42 = vpop.eup %397 }
 0x32b   :  { %v400_v43 = vpop.eup %399  ;;  %v187_v44 = vadd.f32 1.0, %v398_v42 }
 0x32c   :  { %v196_v45 = vadd.f32 1.0, %v400_v43 }
 0x32d   :  { %401 = vrcp.f32 %v187_v44 }
 0x32e   :  { %403 = vrcp.f32 %v196_v45 }
 0x33a   :  { %v402_v46 = vpop.eup %401 }
 0x33b   :  { %v404_v48 = vpop.eup %403  ;;  %v190_v49 = vmul.f32 %v402_v46, %v183_v38 }
 0x33c   :  { %v199_v50 = vmul.f32 %v404_v48, %v192_v39 }
 0x33d   :  { %v204_v51 = vmul.f32 %v202_v47, %v190_v49 }
 0x33e   :  { %v214_v52 = vmul.f32 %v202_v47, %v199_v50 }
 0x33f   :  { %v205_v53 = vsel %vm139_vm4, %v204_v51, 0.0 }
 0x340   :  { %v206_v54 = vrot.slane %v205_v53, 4  ;;  %v216_v55 = vsel %vm215_vm5, %v214_v52, 0.0 }
 0x341   :  { %v217_v56 = vrot.slane %v216_v55, 4 }
 0x342   :  { %v207_v57 = vadd.f32 %v206_v54, %v205_v53 }
 0x343   :  { %v218_v58 = vadd.f32 %v217_v56, %v216_v55 }
 0x344   :  { %v208_v59 = vrot.slane %v207_v57, 2 }
 0x345   :  { %v219_v60 = vrot.slane %v218_v58, 2 }
 0x346   :  { %v209_v61 = vadd.f32 %v208_v59, %v207_v57 }
 0x347   :  { %v220_v62 = vadd.f32 %v219_v60, %v218_v58 }
 0x348   :  { %v210_v63 = vrot.slane %v209_v61, 1 }
 0x349   :  { %v221_v1 = vrot.slane %v220_v62, 1 }
 0x34a   :  { %v211_v2 = vadd.f32 %v210_v63, %v209_v61 }
 0x34b   :  { %v222_v3 = vadd.f32 %v221_v1, %v220_v62 }
 0x34c   :  { %v213_v4 = vadd.f32 %v212_v0, %v211_v2 }
 0x34d   :  { %v223_v5 = vadd.f32 %v222_v3, %v212_v0 }
 0x34e   :  { %v224_v6 = vsel %vm139_vm4, %v213_v4, 0.0 }
 0x34f   :  { %228 = vrot.lane.b32.xlu1 %v223_v5, %s505_s1  ;;  %225 = vadd.xlane.f32.xlu0 %v224_v6 }
 0x3c1   :  { %v229_v7 = vpop.permute.xlu1 %228 }
 0x3c2   :  { %v231_v8 = vsel %vm146_vm3, %v229_v7, 0.0 }
 0x3c3   :  { %232 = vadd.xlane.f32.xlu1 %v231_v8 }
 0x3d8   :  { %v226_v12 = vpop.xlane.xlu0 %225 }
 0x44c   :  { %v233_v9 = vpop.xlane.xlu1 %232 }
 0x44d   :  { %v234_v10 = vadd.f32 %v233_v9, %v212_v0 }
 0x44f   :  { %v235_v11 = vmul.f32 4.0, %v234_v10 }
 0x451   :  { %v236_v13 = vadd.f32 %v235_v11, %v226_v12 }
 0x453   :  { %v237_v14 = vmul.f32 0.020833334, %v236_v13 }
 0x455   :  { %v239_v15 = vsub.f32 %v223_v5, %v237_v14  ;;  %v238_v16 = vsub.f32 %v213_v4, %v237_v14  ;;  %v240_v22 = vsub.f32 %v212_v0, %v237_v14 }
 0x457   :  { %v245_v17 = vmul.f32 %v239_v15, %v239_v15  ;;  %v241_v18 = vmul.f32 %v238_v16, %v238_v16  ;;  %v253_v23 = vmul.f32 %v240_v22, %v240_v22 }
 0x459   :  { %247 = vrot.lane.b32.xlu0 %v245_v17, %s505_s1  ;;  %v242_v19 = vsel %vm139_vm4, %v241_v18, 0.0 }
 0x45a   :  { %243 = vadd.xlane.f32.xlu1 %v242_v19 }
 0x4cb   :  { %v248_v20 = vpop.permute.xlu0 %247 }
 0x4cc   :  { %v250_v21 = vsel %vm146_vm3, %v248_v20, 0.0 }
 0x4cd   :  { %251 = vadd.xlane.f32.xlu0 %v250_v21 }
 0x4e3   :  { %v244_v27 = vpop.xlane.xlu1 %243 }
 0x556   :  { %v252_v24 = vpop.xlane.xlu0 %251 }
 0x557   :  { %v254_v25 = vadd.f32 %v253_v23, %v252_v24 }
 0x559   :  { %v255_v26 = vmul.f32 4.0, %v254_v25 }
 0x55b   :  { %v256_v28 = vadd.f32 %v255_v26, %v244_v27 }
 0x55d   :  { %v257_v29 = vmul.f32 0.020833334, %v256_v28 }
 0x55f   :  { %v258_v30 = vadd.f32 1e-05, %v257_v29 }
 0x561   :  { %405 = vrsqrt.f32 %v258_v30 }
 0x56e   :  { %v406_v32 = vpop.eup %405 }
 0x56f   :  { %v261_v33 = vmul.f32 %v406_v32, %v260_v31 }
 0x571   :  { %v281_v35 = vmul.f32 %v261_v33, %v240_v22  ;;  %v272_v36 = vmul.f32 %v261_v33, %v239_v15  ;;  %v262_v37 = vmul.f32 %v261_v33, %v238_v16 }
 0x573   :  { %v273_v38 = vadd.f32 %v272_v36, %v263_v34  ;;  %v282_v39 = vadd.f32 %v281_v35, %v263_v34  ;;  %v264_v41 = vadd.f32 %v263_v34, %v262_v37 }
 0x575   :  { %v362_v40 = vmul.f32 -1.442695, %v273_v38  ;;  %v361_v42 = vmul.f32 -1.442695, %v264_v41  ;;  %v363_v51 = vmul.f32 -1.442695, %v282_v39 }
 0x577   :  { %407 = vpow2.f32 %v362_v40 }
 0x578   :  { %409 = vpow2.f32 %v361_v42 }
 0x584   :  { %v408_v43 = vpop.eup %407 }
 0x585   :  { %v277_v44 = vadd.f32 1.0, %v408_v43  ;;  %v410_v45 = vpop.eup %409 }
 0x586   :  { %v268_v46 = vadd.f32 1.0, %v410_v45 }
 0x587   :  { %411 = vrcp.f32 %v277_v44 }
 0x588   :  { %413 = vrcp.f32 %v268_v46 }
 0x589   :  { %415 = vpow2.f32 %v363_v51 }
 0x594   :  { %v412_v47 = vpop.eup %411 }
 0x595   :  { %v280_v48 = vmul.f32 %v412_v47, %v273_v38  ;;  %v414_v49 = vpop.eup %413 }
 0x596   :  { %v271_v50 = vmul.f32 %v414_v49, %v264_v41  ;;  %v416_v52 = vpop.eup %415 }
 0x597   :  { %302 = vrot.lane.b32.xlu0 %v280_v48, %s509_s28  ;;  %296 = vrot.lane.b32.xlu1 %v280_v48, %s510_s29  ;;  %v286_v53 = vadd.f32 1.0, %v416_v52 }
 0x599   :  { %417 = vrcp.f32 %v286_v53 }
 0x59b   :  { %299 = vrot.lane.b32.xlu1 %v280_v48, %s505_s1 }
 0x59f   :  { %291 = vrot.lane.b32.xlu1 %v280_v48, %s511_s30 }
 0x5a3   :  { %310 = vrot.lane.b32.xlu1 %v271_v50, %s512_s4 }
 0x5a6   :  { %v418_v55 = vpop.eup %417 }
 0x5a7   :  { %v289_v59 = vmul.f32 %v418_v55, %v282_v39 }
 0x609   :  { %v297_v54 = vpop.permute.xlu1 %296  ;;  %v303_v57 = vpop.permute.xlu0 %302 }
 0x60d   :  { %v300_v56 = vpop.permute.xlu1 %299 }
 0x60e   :  { %v305_v58 = vsel %vm294_vm6, %v297_v54, %v300_v56 }
 0x60f   :  { %v307_v60 = vsel %vm306_vm7, %v305_v58, %v303_v57 }
 0x610   :  { %v308_v61 = vsel %vm146_vm3, %v307_v60, %v289_v59 }
 0x611   :  { %324 = vrot.lane.b32.xlu0 %v308_v61, %s513_s5  ;;  %v292_v62 = vpop.permute.xlu1 %291 }
 0x612   :  { %v295_v63 = vsel %vm294_vm6, %v289_v59, %v292_v62 }
 0x613   :  { %318 = vrot.lane.b32.xlu1 %v295_v63, %s514_s6 }
 0x615   :  { %v311_v0 = vpop.permute.xlu1 %310 }
 0x616   :  { %v327_v2 = vsel %vm62_vm2, %v295_v63, %v311_v0 }
 0x617   :  { %314 = vrot.lane.b32.xlu1 %v308_v61, %s515_s7 }
 0x61b   :  { %321 = vrot.lane.b32.xlu1 %v271_v50, %s516_s8 }
 0x683   :  { %v325_v7 = vpop.permute.xlu0 %324 }
 0x685   :  { %v319_v1 = vpop.permute.xlu1 %318 }
 0x689   :  { %v315_v3 = vpop.permute.xlu1 %314 }
 0x68a   :  { %v329_v4 = vsel %vm328_vm8, %v327_v2, %v315_v3 }
 0x68b   :  { %v331_v5 = vsel %vm330_vm9, %v329_v4, %v319_v1 }
 0x68d   :  { %v322_v6 = vpop.permute.xlu1 %321 }
 0x68e   :  { %v333_v8 = vsel %vm332_vm10, %v331_v5, %v322_v6 }
 0x68f   :  { %v335_v9 = vsel %vm334_vm11, %v333_v8, %v325_v7 }
 0x690   :  { %337 = vst.msk [vmem:[#allocation9] sm:$0x1] %vm336_vm12, %v335_v9 }
 0x691   :  { %482 = shalt.err (!%p479_p5)
}
 0x692   :  { %347 = dma.vmem_to_hbm [thread:$0]  %s345_s10, 16, %s570_s3, [#allocation4]  }
 0x693   :  { %497 = dma.done.wait [#allocation4], 16  }
 0x694   :  { %498 = vsyncadd [#allocation4], 4294967280 }
 0x695   :  { %351 = vsyncpa [#allocation3], 1 }
 0x696   :  { %352 = vsyncpa [#allocation7], 1 }
 0x697   :  { %353 = vsyncpa [#allocation4], 1 }
 0x698   :  { %354 = vsyncpa [#allocation5], 1 }

</bundles_post_ra>
